<compile_context>
chip_gen: v5e
topology: v5e:2x2
jax: 0.10.0
libtpu: 0.0.40
codegen_flags: <defaults>
</compile_context>

<pallas_src>
import jax
import jax.numpy as jnp
from jax import lax
from jax.experimental import pallas as pl
from jax.experimental.pallas import tpu as pltpu


def _round_up(x, m):
    return ((x + m - 1) // m) * m


def rnn_kernel(x_ref, lens_ref, wih_ref, whh_ref, b_ref, wfc_ref, bfc_ref,
               out_ref, h_scratch):
    # grid = (batch_block, time_chunk); time is the serial (arbitrary) axis.
    t = pl.program_id(1)
    nt = pl.num_programs(1)

    @pl.when(t == 0)
    def _():
        h_scratch[...] = jnp.zeros_like(h_scratch)

    tc, bt, ep = x_ref.shape
    hp = h_scratch.shape[-1]

    # Hoisted input projection for the whole chunk: one MXU-shaped GEMM,
    # biases (b_ih + b_hh) pre-summed in the wrapper and folded in here.
    xproj = (jnp.dot(x_ref[...].reshape(tc * bt, ep), wih_ref[...],
                     preferred_element_type=jnp.float32)
             + b_ref[...]).reshape(tc, bt, hp)            # (tc, bt, hp) f32

    # Packing mask, hoisted: steps remaining for each row at chunk start.
    rem = lens_ref[...] - t * tc                          # (bt, 1) int32

    w_hh = whh_ref[...]                                   # (hp, hp) bf16
    h = h_scratch[...]                                    # (bt, hp) f32

    # Statically unrolled serial recurrence over the chunk (tc is compile-time).
    for i in range(tc):
        h_new = jnp.tanh(
            xproj[i]
            + jnp.dot(h.astype(w_hh.dtype), w_hh,
                      preferred_element_type=jnp.float32))
        # pack_padded semantics: hidden stops updating once t >= length.
        h = jnp.where(i < rem, h_new, h)

    h_scratch[...] = h

    @pl.when(t == nt - 1)
    def _():
        out_ref[...] = (
            jnp.dot(h_scratch[...].astype(wfc_ref.dtype), wfc_ref[...],
                    preferred_element_type=jnp.float32)
            + bfc_ref[...])


def rnn_forward(text, text_lengths, params, *, tc=8, bt=None):
    """text: (B, T) int32 token ids; text_lengths: (B,) int32."""
    emb = params["embedding"]          # (V, E)
    w_ih = params["w_ih"]              # (E, H)  (pre-transposed)
    w_hh = params["w_hh"]              # (H, H)
    b_ih = params["b_ih"]              # (1, H)
    b_hh = params["b_hh"]              # (1, H)
    w_fc = params["w_fc"]              # (H, O)  (pre-transposed)
    b_fc = params["b_fc"]              # (1, O)

    B, T = text.shape
    E = emb.shape[1]
    H = w_hh.shape[0]
    O = w_fc.shape[1]

    f32, bf16 = jnp.float32, jnp.bfloat16

    # Hardware-granule padding: sublane (8) on batch, lane/MXU (128) on E/H/O.
    Bp = _round_up(max(B, 8), 8)
    if bt is None:
        bt = Bp
    Bp = _round_up(Bp, bt)
    Ep = _round_up(E, 128)
    Hp = _round_up(H, 128)
    Op = _round_up(O, 128)
    Tp = _round_up(T, tc)

    # Padded, bf16 matmul operands; biases pre-summed, kept f32.
    w_ih_p = jnp.zeros((Ep, Hp), bf16).at[:E, :H].set(w_ih.astype(bf16))
    w_hh_p = jnp.zeros((Hp, Hp), bf16).at[:H, :H].set(w_hh.astype(bf16))
    w_fc_p = jnp.zeros((Hp, Op), bf16).at[:H, :O].set(w_fc.astype(bf16))
    b_p = jnp.zeros((1, Hp), f32).at[:, :H].set((b_ih + b_hh).astype(f32))
    b_fc_p = jnp.zeros((1, Op), f32).at[:, :O].set(b_fc.astype(f32))

    # Embedding gather directly into time-major (T, B, E) — no big transpose.
    x_tbe = jnp.take(emb.astype(bf16), text.T.astype(jnp.int32), axis=0)
    x_p = jnp.zeros((Tp, Bp, Ep), bf16).at[:T, :B, :E].set(x_tbe)

    # Padded batch rows get length 0 -> hidden stays 0 and is sliced away.
    lens_p = jnp.zeros((Bp, 1), jnp.int32).at[:B, 0].set(
        text_lengths.astype(jnp.int32))

    nb = Bp // bt
    nt = Tp // tc

    grid_spec = pltpu.PrefetchScalarGridSpec(
        num_scalar_prefetch=0,
        grid=(nb, nt),
        in_specs=[
            pl.BlockSpec((tc, bt, Ep), lambda b, t: (t, b, 0)),  # x chunk
            pl.BlockSpec((bt, 1),      lambda b, t: (b, 0)),     # lengths
            pl.BlockSpec((Ep, Hp),     lambda b, t: (0, 0)),     # W_ih^T
            pl.BlockSpec((Hp, Hp),     lambda b, t: (0, 0)),     # W_hh^T
            pl.BlockSpec((1, Hp),      lambda b, t: (0, 0)),     # b_ih + b_hh
            pl.BlockSpec((Hp, Op),     lambda b, t: (0, 0)),     # W_fc^T
            pl.BlockSpec((1, Op),      lambda b, t: (0, 0)),     # b_fc
        ],
        out_specs=pl.BlockSpec((bt, Op), lambda b, t: (b, 0)),
        scratch_shapes=[pltpu.VMEM((bt, Hp), jnp.float32)],
    )

    out_p = pl.pallas_call(
        rnn_kernel,
        out_shape=jax.ShapeDtypeStruct((Bp, Op), jnp.float32),
        grid_spec=grid_spec,
        compiler_params=pltpu.CompilerParams(
            dimension_semantics=("parallel", "arbitrary")),
    )(x_p, lens_p, w_ih_p, w_hh_p, b_p, w_fc_p, b_fc_p)

    return out_p[:B, :O]


def rnn_reference(text, text_lengths, params):
    """Pure-JAX reference with identical math (bf16 matmuls, f32 state)."""
    bf16, f32 = jnp.bfloat16, jnp.float32
    B, T = text.shape
    H = params["w_hh"].shape[0]

    emb = params["embedding"].astype(bf16)
    w_ih = params["w_ih"].astype(bf16)
    w_hh = params["w_hh"].astype(bf16)
    w_fc = params["w_fc"].astype(bf16)
    b = (params["b_ih"] + params["b_hh"]).astype(f32)
    b_fc = params["b_fc"].astype(f32)
    lens = text_lengths.astype(jnp.int32).reshape(B, 1)

    x_tbe = jnp.take(emb, text.T.astype(jnp.int32), axis=0)          # (T,B,E)
    xproj = jnp.einsum("tbe,eh->tbh", x_tbe, w_ih,
                       preferred_element_type=f32) + b                # (T,B,H)

    def step(h, inputs):
        xp_t, t = inputs
        h_new = jnp.tanh(xp_t + jnp.dot(h.astype(bf16), w_hh,
                                        preferred_element_type=f32))
        return jnp.where(t < lens, h_new, h), None

    h0 = jnp.zeros((B, H), f32)
    h_last, _ = lax.scan(step, h0, (xproj, jnp.arange(T)))
    return jnp.dot(h_last.astype(bf16), w_fc, preferred_element_type=f32) + b_fc


def init_params(key, vocab_size, embedding_dim, hidden_dim, output_dim):
    ks = jax.random.split(key, 7)
    s = 0.1
    return {
        "embedding": s * jax.random.normal(ks[0], (vocab_size, embedding_dim), jnp.float32),
        "w_ih": s * jax.random.normal(ks[1], (embedding_dim, hidden_dim), jnp.float32),
        "w_hh": s * jax.random.normal(ks[2], (hidden_dim, hidden_dim), jnp.float32),
        "b_ih": s * jax.random.normal(ks[3], (1, hidden_dim), jnp.float32),
        "b_hh": s * jax.random.normal(ks[4], (1, hidden_dim), jnp.float32),
        "w_fc": s * jax.random.normal(ks[5], (hidden_dim, output_dim), jnp.float32),
        "b_fc": s * jax.random.normal(ks[6], (1, output_dim), jnp.float32),
    }


if __name__ == "__main__":
    vocab_size, embedding_dim, hidden_dim, output_dim = 100, 32, 32, 4
    B, T = 2, 8

    key = jax.random.PRNGKey(0)
    kp, kt, kl = jax.random.split(key, 3)
    params = init_params(kp, vocab_size, embedding_dim, hidden_dim, output_dim)

    text = jax.random.randint(kt, (B, T), 0, vocab_size, dtype=jnp.int32)
    text_lengths = jnp.array([T, T - 3], dtype=jnp.int32)  # variable lengths (packing)

    # tc=4 -> two time chunks so the carried VMEM hidden-state path is exercised.
    out = rnn_forward(text, text_lengths, params, tc=4)
    out = jax.block_until_ready(out)

    ref = rnn_reference(text, text_lengths, params)
    assert out.shape == (B, output_dim)
    assert jnp.allclose(out, ref, atol=1e-3, rtol=1e-3), (out, ref)

    print("KERNEL_OK")
</pallas_src>

<mosaic_0001>
module attributes {stable_mosaic.version = 11 : i64} {
  func.func @rnn_kernel(%arg0: i32, %arg1: i32, %arg2: memref<4x8x128xbf16, #tpu.memory_space<vmem>>, %arg3: memref<8x1xi32, #tpu.memory_space<vmem>>, %arg4: memref<128x128xbf16, #tpu.memory_space<vmem>>, %arg5: memref<128x128xbf16, #tpu.memory_space<vmem>>, %arg6: memref<1x128xf32, #tpu.memory_space<vmem>>, %arg7: memref<128x128xbf16, #tpu.memory_space<vmem>>, %arg8: memref<1x128xf32, #tpu.memory_space<vmem>>, %arg9: memref<8x128xf32, #tpu.memory_space<vmem>>, %arg10: memref<8x128xf32, #tpu.memory_space<vmem>>) attributes {dimension_semantics = [#tpu.dimension_semantics<parallel>, #tpu.dimension_semantics<arbitrary>], iteration_bounds = array<i64: 1, 2>, scalar_prefetch = 0 : i64, scratch_operands = 1 : i64, tpu.core_type = #tpu.core_type<tc>, window_params = [{transform_indices = @transform_0, window_bounds = array<i64: 4, 8, 128>}, {transform_indices = @transform_1, window_bounds = array<i64: 8, 1>}, {pipeline_mode = #tpu.pipeline_mode<synchronous>, transform_indices = @transform_2, window_bounds = array<i64: 128, 128>}, {pipeline_mode = #tpu.pipeline_mode<synchronous>, transform_indices = @transform_3, window_bounds = array<i64: 128, 128>}, {pipeline_mode = #tpu.pipeline_mode<synchronous>, transform_indices = @transform_4, window_bounds = array<i64: 1, 128>}, {pipeline_mode = #tpu.pipeline_mode<synchronous>, transform_indices = @transform_5, window_bounds = array<i64: 128, 128>}, {pipeline_mode = #tpu.pipeline_mode<synchronous>, transform_indices = @transform_6, window_bounds = array<i64: 1, 128>}, {transform_indices = @transform_7, window_bounds = array<i64: 8, 128>}]} {
    %c0_i32 = arith.constant 0 : i32
    %0 = arith.cmpi eq, %arg1, %c0_i32 : i32
    %1 = arith.extui %0 : i1 to i32
    %c0_i32_0 = arith.constant 0 : i32
    %2 = arith.cmpi ne, %1, %c0_i32_0 : i32
    scf.if %2 {
      %cst_22 = arith.constant 0.000000e+00 : f32
      %65 = vector.broadcast %cst_22 : f32 to vector<8x128xf32>
      %c0_23 = arith.constant 0 : index
      %c0_24 = arith.constant 0 : index
      %66 = vector.load %arg10[%c0_23, %c0_24] : memref<8x128xf32, #tpu.memory_space<vmem>>, vector<8x128xf32>
      tpu.vector_store %arg10[%c0_23, %c0_24], %65 {strides = array<i32>} : memref<8x128xf32, #tpu.memory_space<vmem>>, vector<8x128xf32>,
    } else {
    }
    %c0 = arith.constant 0 : index
    %c0_1 = arith.constant 0 : index
    %c0_2 = arith.constant 0 : index
    %3 = vector.load %arg2[%c0, %c0_1, %c0_2] : memref<4x8x128xbf16, #tpu.memory_space<vmem>>, vector<4x8x128xbf16>
    %4 = vector.shape_cast %3 : vector<4x8x128xbf16> to vector<32x128xbf16>
    %c0_3 = arith.constant 0 : index
    %c0_4 = arith.constant 0 : index
    %5 = vector.load %arg4[%c0_3, %c0_4] : memref<128x128xbf16, #tpu.memory_space<vmem>>, vector<128x128xbf16>
    %cst = arith.constant dense<0.000000e+00> : vector<32x128xf32>
    %6 = tpu.matmul %4, %5, %cst {dimension_numbers = #tpu.dot_dimension_numbers<[1], [0], [0], [1], [0, 0, 1, 1], [], []>} : vector<32x128xbf16>, vector<128x128xbf16>, vector<32x128xf32> -> vector<32x128xf32>
    %c0_5 = arith.constant 0 : index
    %c0_6 = arith.constant 0 : index
    %7 = vector.load %arg6[%c0_5, %c0_6] : memref<1x128xf32, #tpu.memory_space<vmem>>, vector<1x128xf32>
    %8 = vector.broadcast %7 : vector<1x128xf32> to vector<32x128xf32>
    %9 = arith.addf %6, %8 : vector<32x128xf32>
    %10 = vector.shape_cast %9 : vector<32x128xf32> to vector<4x8x128xf32>
    %c0_7 = arith.constant 0 : index
    %c0_8 = arith.constant 0 : index
    %11 = vector.load %arg3[%c0_7, %c0_8] : memref<8x1xi32, #tpu.memory_space<vmem>>, vector<8x1xi32>
    %c4_i32 = arith.constant 4 : i32
    %12 = arith.muli %arg1, %c4_i32 : i32
    %13 = vector.broadcast %12 : i32 to vector<8x1xi32>
    %14 = arith.subi %11, %13 : vector<8x1xi32>
    %c0_9 = arith.constant 0 : index
    %c0_10 = arith.constant 0 : index
    %15 = vector.load %arg5[%c0_9, %c0_10] : memref<128x128xbf16, #tpu.memory_space<vmem>>, vector<128x128xbf16>
    %c0_11 = arith.constant 0 : index
    %c0_12 = arith.constant 0 : index
    %16 = vector.load %arg10[%c0_11, %c0_12] : memref<8x128xf32, #tpu.memory_space<vmem>>, vector<8x128xf32>
    %17 = vector.extract_strided_slice %10 {offsets = [0, 0, 0], sizes = [1, 8, 128], strides = [1, 1, 1]} : vector<4x8x128xf32> to vector<1x8x128xf32>
    %18 = vector.shape_cast %17 : vector<1x8x128xf32> to vector<8x128xf32>
    %19 = arith.truncf %16 : vector<8x128xf32> to vector<8x128xbf16>
    %cst_13 = arith.constant dense<0.000000e+00> : vector<8x128xf32>
    %20 = tpu.matmul %19, %15, %cst_13 {dimension_numbers = #tpu.dot_dimension_numbers<[1], [0], [0], [1], [0, 0, 1, 1], [], []>} : vector<8x128xbf16>, vector<128x128xbf16>, vector<8x128xf32> -> vector<8x128xf32>
    %21 = arith.addf %18, %20 : vector<8x128xf32>
    %22 = math.tanh %21 : vector<8x128xf32>
    %c0_i32_14 = arith.constant 0 : i32
    %23 = vector.broadcast %c0_i32_14 : i32 to vector<8x1xi32>
    %24 = arith.cmpi sgt, %14, %23 : vector<8x1xi32>
    %25 = vector.shape_cast %24 : vector<8x1xi1> to vector<8x1xi1>
    %26 = vector.broadcast %25 : vector<8x1xi1> to vector<8x128xi1>
    %27 = arith.select %26, %22, %16 : vector<8x128xi1>, vector<8x128xf32>
    %28 = vector.extract_strided_slice %10 {offsets = [1, 0, 0], sizes = [1, 8, 128], strides = [1, 1, 1]} : vector<4x8x128xf32> to vector<1x8x128xf32>
    %29 = vector.shape_cast %28 : vector<1x8x128xf32> to vector<8x128xf32>
    %30 = arith.truncf %27 : vector<8x128xf32> to vector<8x128xbf16>
    %cst_15 = arith.constant dense<0.000000e+00> : vector<8x128xf32>
    %31 = tpu.matmul %30, %15, %cst_15 {dimension_numbers = #tpu.dot_dimension_numbers<[1], [0], [0], [1], [0, 0, 1, 1], [], []>} : vector<8x128xbf16>, vector<128x128xbf16>, vector<8x128xf32> -> vector<8x128xf32>
    %32 = arith.addf %29, %31 : vector<8x128xf32>
    %33 = math.tanh %32 : vector<8x128xf32>
    %c1_i32 = arith.constant 1 : i32
    %34 = vector.broadcast %c1_i32 : i32 to vector<8x1xi32>
    %35 = arith.cmpi sgt, %14, %34 : vector<8x1xi32>
    %36 = vector.shape_cast %35 : vector<8x1xi1> to vector<8x1xi1>
    %37 = vector.broadcast %36 : vector<8x1xi1> to vector<8x128xi1>
    %38 = arith.select %37, %33, %27 : vector<8x128xi1>, vector<8x128xf32>
    %39 = vector.extract_strided_slice %10 {offsets = [2, 0, 0], sizes = [1, 8, 128], strides = [1, 1, 1]} : vector<4x8x128xf32> to vector<1x8x128xf32>
    %40 = vector.shape_cast %39 : vector<1x8x128xf32> to vector<8x128xf32>
    %41 = arith.truncf %38 : vector<8x128xf32> to vector<8x128xbf16>
    %cst_16 = arith.constant dense<0.000000e+00> : vector<8x128xf32>
    %42 = tpu.matmul %41, %15, %cst_16 {dimension_numbers = #tpu.dot_dimension_numbers<[1], [0], [0], [1], [0, 0, 1, 1], [], []>} : vector<8x128xbf16>, vector<128x128xbf16>, vector<8x128xf32> -> vector<8x128xf32>
    %43 = arith.addf %40, %42 : vector<8x128xf32>
    %44 = math.tanh %43 : vector<8x128xf32>
    %c2_i32 = arith.constant 2 : i32
    %45 = vector.broadcast %c2_i32 : i32 to vector<8x1xi32>
    %46 = arith.cmpi sgt, %14, %45 : vector<8x1xi32>
    %47 = vector.shape_cast %46 : vector<8x1xi1> to vector<8x1xi1>
    %48 = vector.broadcast %47 : vector<8x1xi1> to vector<8x128xi1>
    %49 = arith.select %48, %44, %38 : vector<8x128xi1>, vector<8x128xf32>
    %50 = vector.extract_strided_slice %10 {offsets = [3, 0, 0], sizes = [1, 8, 128], strides = [1, 1, 1]} : vector<4x8x128xf32> to vector<1x8x128xf32>
    %51 = vector.shape_cast %50 : vector<1x8x128xf32> to vector<8x128xf32>
    %52 = arith.truncf %49 : vector<8x128xf32> to vector<8x128xbf16>
    %cst_17 = arith.constant dense<0.000000e+00> : vector<8x128xf32>
    %53 = tpu.matmul %52, %15, %cst_17 {dimension_numbers = #tpu.dot_dimension_numbers<[1], [0], [0], [1], [0, 0, 1, 1], [], []>} : vector<8x128xbf16>, vector<128x128xbf16>, vector<8x128xf32> -> vector<8x128xf32>
    %54 = arith.addf %51, %53 : vector<8x128xf32>
    %55 = math.tanh %54 : vector<8x128xf32>
    %c3_i32 = arith.constant 3 : i32
    %56 = vector.broadcast %c3_i32 : i32 to vector<8x1xi32>
    %57 = arith.cmpi sgt, %14, %56 : vector<8x1xi32>
    %58 = vector.shape_cast %57 : vector<8x1xi1> to vector<8x1xi1>
    %59 = vector.broadcast %58 : vector<8x1xi1> to vector<8x128xi1>
    %60 = arith.select %59, %55, %49 : vector<8x128xi1>, vector<8x128xf32>
    %c0_18 = arith.constant 0 : index
    %c0_19 = arith.constant 0 : index
    %61 = vector.load %arg10[%c0_18, %c0_19] : memref<8x128xf32, #tpu.memory_space<vmem>>, vector<8x128xf32>
    tpu.vector_store %arg10[%c0_18, %c0_19], %60 {strides = array<i32>} : memref<8x128xf32, #tpu.memory_space<vmem>>, vector<8x128xf32>,
    %c1_i32_20 = arith.constant 1 : i32
    %62 = arith.cmpi eq, %arg1, %c1_i32_20 : i32
    %63 = arith.extui %62 : i1 to i32
    %c0_i32_21 = arith.constant 0 : i32
    %64 = arith.cmpi ne, %63, %c0_i32_21 : i32
    scf.if %64 {
      %c0_22 = arith.constant 0 : index
      %c0_23 = arith.constant 0 : index
      %65 = vector.load %arg10[%c0_22, %c0_23] : memref<8x128xf32, #tpu.memory_space<vmem>>, vector<8x128xf32>
      %66 = arith.truncf %65 : vector<8x128xf32> to vector<8x128xbf16>
      %c0_24 = arith.constant 0 : index
      %c0_25 = arith.constant 0 : index
      %67 = vector.load %arg7[%c0_24, %c0_25] : memref<128x128xbf16, #tpu.memory_space<vmem>>, vector<128x128xbf16>
      %cst_26 = arith.constant dense<0.000000e+00> : vector<8x128xf32>
      %68 = tpu.matmul %66, %67, %cst_26 {dimension_numbers = #tpu.dot_dimension_numbers<[1], [0], [0], [1], [0, 0, 1, 1], [], []>} : vector<8x128xbf16>, vector<128x128xbf16>, vector<8x128xf32> -> vector<8x128xf32>
      %c0_27 = arith.constant 0 : index
      %c0_28 = arith.constant 0 : index
      %69 = vector.load %arg8[%c0_27, %c0_28] : memref<1x128xf32, #tpu.memory_space<vmem>>, vector<1x128xf32>
      %70 = vector.broadcast %69 : vector<1x128xf32> to vector<8x128xf32>
      %71 = arith.addf %68, %70 : vector<8x128xf32>
      %c0_29 = arith.constant 0 : index
      %c0_30 = arith.constant 0 : index
      %72 = vector.load %arg9[%c0_29, %c0_30] : memref<8x128xf32, #tpu.memory_space<vmem>>, vector<8x128xf32>
      tpu.vector_store %arg9[%c0_29, %c0_30], %71 {strides = array<i32>} : memref<8x128xf32, #tpu.memory_space<vmem>>, vector<8x128xf32>,
    } else {
    }
    return
  }
  func.func @transform_0(%arg0: i32, %arg1: i32) -> (i32, i32, i32) {
    %c0_i32 = arith.constant 0 : i32
    %c0_i32_0 = arith.constant 0 : i32
    return %arg1, %arg0, %c0_i32 : i32, i32, i32
  }
  func.func @transform_1(%arg0: i32, %arg1: i32) -> (i32, i32) {
    %c0_i32 = arith.constant 0 : i32
    %c0_i32_0 = arith.constant 0 : i32
    return %arg0, %c0_i32 : i32, i32
  }
  func.func @transform_2(%arg0: i32, %arg1: i32) -> (i32, i32) {
    %c0_i32 = arith.constant 0 : i32
    %c0_i32_0 = arith.constant 0 : i32
    %c0_i32_1 = arith.constant 0 : i32
    return %c0_i32, %c0_i32_0 : i32, i32
  }
  func.func @transform_3(%arg0: i32, %arg1: i32) -> (i32, i32) {
    %c0_i32 = arith.constant 0 : i32
    %c0_i32_0 = arith.constant 0 : i32
    %c0_i32_1 = arith.constant 0 : i32
    return %c0_i32, %c0_i32_0 : i32, i32
  }
  func.func @transform_4(%arg0: i32, %arg1: i32) -> (i32, i32) {
    %c0_i32 = arith.constant 0 : i32
    %c0_i32_0 = arith.constant 0 : i32
    %c0_i32_1 = arith.constant 0 : i32
    return %c0_i32, %c0_i32_0 : i32, i32
  }
  func.func @transform_5(%arg0: i32, %arg1: i32) -> (i32, i32) {
    %c0_i32 = arith.constant 0 : i32
    %c0_i32_0 = arith.constant 0 : i32
    %c0_i32_1 = arith.constant 0 : i32
    return %c0_i32, %c0_i32_0 : i32, i32
  }
  func.func @transform_6(%arg0: i32, %arg1: i32) -> (i32, i32) {
    %c0_i32 = arith.constant 0 : i32
    %c0_i32_0 = arith.constant 0 : i32
    %c0_i32_1 = arith.constant 0 : i32
    return %c0_i32, %c0_i32_0 : i32, i32
  }
  func.func @transform_7(%arg0: i32, %arg1: i32) -> (i32, i32) {
    %c0_i32 = arith.constant 0 : i32
    %c0_i32_0 = arith.constant 0 : i32
    return %arg0, %c0_i32 : i32, i32
  }
}

</mosaic_0001>

<bundles_post_ra>
// kernel: tpu_custom_call.1
= control target key start
LH: loop header
LB: loop body
LE: loop exit
PB: predicated region body
PF: predicated region fallthrough
CT: control target
= control target key end

     0   :  { %s1549_s0 = inlined_call_operand.hbm [shape: bf16[8,8,128], index: 0, kind: input, shape index: {}]   ;;  %s1550_s1 = inlined_call_operand.vmem [shape: s32[8,1], index: 1, kind: input, shape index: {}]   ;;  %s1551_s2 = inlined_call_operand.hbm [shape: bf16[128,128], index: 2, kind: input, shape index: {}]   ;;  %s1552_s3 = inlined_call_operand.hbm [shape: bf16[128,128], index: 3, kind: input, shape index: {}]   ;;  %s1553_s4 = inlined_call_operand.vmem [shape: f32[1,128], index: 4, kind: input, shape index: {}]   ;;  %s1554_s5 = inlined_call_operand.hbm [shape: bf16[128,128], index: 5, kind: input, shape index: {}]   ;;  %s1555_s6 = inlined_call_operand.vmem [shape: f32[1,128], index: 6, kind: input, shape index: {}]   ;;  %s1556_s7 = inlined_call_operand.hbm [shape: f32[8,128], index: 7, kind: output, shape index: {}]  }
   0x1   :  { %1560 = sst [smem:[#allocation16_spill]] %s1551_s2 }
   0x2   :  { %1561 = sst [smem:[#allocation17_spill]] %s1552_s3 }
   0x3   :  { %12 = vsyncpa [#allocation4], 0 }
   0x4   :  { %14 = vsyncpa [#allocation4 + $0x1], 0 }
   0x5   :  { %15 = vsyncpa [#allocation7], 0 }
   0x6   :  { %16 = vsyncpa [#allocation10], 0 }
   0x7   :  { %17 = vsyncpa [#allocation5], 0  ;;  %s1373_s24 = smov 0   ;;  %s1375_s25 = smov 0  }
   0x8   :  { %s1377_s26 = smov 0   ;;  %s1379_s27 = smov 0  }
   0x9   :  { %s1381_s28 = smov 0   ;;  %s1383_s29 = smov 0  }
   0xa LB: > { %s1557_s30 = sadd.s32 4294967295, %s1323_s29   ;;  %p57_p0 = scmp.ne.s32.totalorder %s1307_s25, %s1303_s24  ;;  %s1323_s29 = sphi %s1383_s29, %s23_s29   ;;  %s1319_s28 = sphi %s1381_s28, %s1577_s28   ;;  %s1315_s27 = sphi %s1379_s27, %s1576_s27   ;;  %s1311_s26 = sphi %s1377_s26, %s1575_s26   ;;  %s1307_s25 = sphi %s1375_s25, %s1574_s25   ;;  %s1303_s24 = sphi %s1373_s24, %s1573_s24  }
   0xb   : > { %p1405_p1 = scmp.eq.s32.totalorder %s1557_s30, 0  ;;  %p852_p2 = scmp.ge.s32.totalorder %s1323_s29, 1 }
   0xc   : > { %p225_p3 = scmp.lt.s32.totalorder %s1323_s29, 3  ;;  %s1564_s2 = sld [smem:[#allocation16_spill]] }
   0xd   : > { %p1413_p4 = por %p1405_p1, %p57_p0  ;;  %s1325_s14 = smov [#allocation6]  }
   0xe   : > { %p1420_p5 = pnand %p852_p2, %p225_p3  ;;  %s245_s15 = sshll.u32 %s1325_s14, 4  ;;  %s246_s15 = int_to_ptr.vmem [resolvable:$true] %s245_s15 }
   0xf   : > { %s1567_s3 = sld [smem:[#allocation17_spill]]  ;;  %s1558_s20 = smov 64  }
  0x10   : > { %p1022_p6 = pneg %p1420_p5  ;;  %s1559_s21 = smov 4  }
  0x11   : > { %s1328_s22 = smov [#allocation8]   ;;  %s274_s11 = sshll.u32 %s1554_s5, 4  ;;  %s275_s11 = int_to_ptr.hbm [resolvable:$true] %s274_s11 }
  0x12   : > { %s243_s12 = sshll.u32 %s1564_s2, 4  ;;  %p1428_p7 = pnand %p1022_p6, %p1405_p1  ;;  %s244_s12 = int_to_ptr.hbm [resolvable:$true] %s243_s12 }
  0x13   : > { %s259_s23 = sshll.u32 %s1328_s22, 4  ;;  %s1329_s14 = smov [#allocation9]   ;;  %s260_s23 = int_to_ptr.vmem [resolvable:$true] %s259_s23 }
  0x14   : > { %1025 = dma.hbm_to_vmem [thread:$0]  (!%p1428_p7), %s244_s12, 1024, %s246_s15, [#allocation7], %s1558_s20, %s1558_s20, %s1559_s21  }
  0x15   : > { %s257_s19 = sshll.u32 %s1567_s3, 4  ;;  %s276_s12 = sshll.u32 %s1329_s14, 4  ;;  %s258_s19 = int_to_ptr.hbm [resolvable:$true] %s257_s19  ;;  %s277_s12 = int_to_ptr.vmem [resolvable:$true] %s276_s12 }
  0x16   : > { %1028 = dma.hbm_to_vmem [thread:$0]  (!%p1428_p7), %s258_s19, 1024, %s260_s23, [#allocation7], %s1558_s20, %s1558_s20, %s1559_s21  }
  0x17   : > { %1031 = dma.hbm_to_vmem [thread:$0]  (!%p1428_p7), %s275_s11, 1024, %s277_s12, [#allocation10], %s1558_s20, %s1558_s20, %s1559_s21  }
  0x18   : > { %s32_s15 = sadd.s32 1, %s1319_s28  ;;  %p51_p9 = scmp.ne.s32.totalorder %s1311_s26, %s1307_s25 }
  0x19   : > { %p33_p8 = scmp.ge.s32.totalorder %s32_s15, 2  ;;  %p52_p10 = scmp.eq.s32.totalorder %s1323_s29, 0 }
  0x1a   : > { %s44_s17 = sadd.s32 1, %s1311_s26  ;;  %s293_s22 = sand.u32 1, %s1311_s26  }
  0x1b   : > { %s1579_s15 = smov (%p33_p8, %s32_s15), 0  ;;  %p1460_p11 = por %p52_p10, %p51_p9 }
  0x1c   : > { %s39_s19 = ssub.s32 %s1319_s28, %s1579_s15  ;;  %p1039_p13 = scmp.lt.s32.totalorder %s1323_s29, 2 }
  0x1d   : > { %p42_p12 = scmp.eq.s32.totalorder %s39_s19, 0  ;;  %s858_s16 = sshll.u32 %s293_s22, 4 }
  0x1e   : > { %s977_s23 = sshll.u32 %s1319_s28, 4  ;;  %s297_s30 = scalar_lea.vmem [#allocation3], %s858_s16 }
  0x1f   : > { %s1470_s24 = scalar_select %p42_p12, %s1311_s26, %s44_s17  }
  0x20   : > { %s303_s14 = scalar_lea.hbm %s1549_s0, %s977_s23  ;;  %s306_s20 = sshll.u32 %s297_s30, 4  ;;  %s307_s20 = int_to_ptr.vmem [resolvable:$true] %s306_s20 }
  0x21   : > { %s304_s12 = sshll.u32 %s303_s14, 4  ;;  %p1033_p0 = pnand %p1039_p13, %p1460_p11  ;;  %s305_s12 = int_to_ptr.hbm [resolvable:$true] %s304_s12 }
  0x22   : > { %s294_s21 = scalar_lea.sflag [#allocation4], %s293_s22  ;;  %s1569_s2 = smov 4  }
  0x23   : > { %s1570_s3 = smov 64   ;;  %318 = sbr.rel (%p1420_p5) target bundleno = 823 (0x337), region = 48 }
  0x24   : > { %1035 = dma.hbm_to_vmem [thread:$0]  (!%p1033_p0), %s305_s12, 256, %s307_s20, %s294_s21, %s1570_s3, %s1570_s3, %s1569_s2  }
  0x25   : > { %s320_s17 = sand.u32 (!%p1420_p5), 1, %s1307_s25  }
  0x26   : > { %s1483_s19 = sshll.u32 (!%p1420_p5), %s320_s17, 4  ;;  %s321_s16 = scalar_lea.sflag (!%p1420_p5), [#allocation4], %s320_s17 }
  0x27   : > { %s324_s30 = scalar_lea.vmem (!%p1420_p5), [#allocation3], %s1483_s19 }
  0x28   : > { %1286 = dma.done.wait (%p1413_p4), %s321_s16, 256  }
  0x29   : > { %1288 = vsyncadd (%p1413_p4), %s321_s16, 4294967040 }
  0x2a   : > { %1290 = dma.done.wait (%p1405_p1), [#allocation7], 2048  }
  0x2b   : > { %1292 = vsyncadd (%p1405_p1), [#allocation7], 4294965248 }
  0x2c   : > { %1294 = dma.done.wait (%p1405_p1), [#allocation10], 1024  }
  0x2d   : > { %1296 = vsyncadd (%p1405_p1), [#allocation10], 4294966272  ;;  %p866_p2 = scmp.ne.s32.totalorder %s1315_s27, 0 }
  0x2f   : > { %378 = sbr.rel (%p866_p2) target bundleno = 54 (0x36), region = 68 }
  0x34   : > { %v1330_v0 = vmov 0.0  }
  0x35   : > { %379 = vst [vmem:[#allocation2] sm:$0xff] %v1330_v0 }
  0x36 PF: > { %v987_v1 = vld [vmem:[#allocation6 + $0x38] sm:$0xff]  ;;  %s907_s2 = sshll.u32 %s1315_s27, 2  ;;  %v986_v3 = vld [vmem:[#allocation6 + $0x30] sm:$0xff]  ;;  %v1331_v5 = vmov 0   ;;  %v985_v7 = vld [vmem:[#allocation6 + $0x28] sm:$0xff]  ;;  %p940_p1 = scmp.ne.s32.totalorder %s1315_s27, 1 }
  0x37   : > { %v995_v2 = vld [vmem:[#allocation8 + $0x38] sm:$0xff]  ;;  %464 = vmatpush.bf16.msra.mxu0 %v987_v1  ;;  %v994_v4 = vld [vmem:[#allocation8 + $0x30] sm:$0xff]  ;;  %1101 = vset.pattern.permute.xlu0 %v1331_v5  ;;  %v485_v6 = vstv %s907_s2  ;;  %v993_v8 = vld [vmem:[#allocation8 + $0x28] sm:$0xff] }
  0x38   : > { %553 = vmatpush.bf16.msra.mxu1 %v995_v2  ;;  %576 = vmatpush.bf16.msra.mxu2 %v995_v2  ;;  %v483_v9 = vld [vmem:[%s1550_s1] sm:$0xff]  ;;  %v984_v11 = vld [vmem:[#allocation6 + $0x20] sm:$0xff]  ;;  %v982_v17 = vld [vmem:[#allocation6 + $0x10] sm:$0xff] }
  0x39   : > { %599 = vmatpush.bf16.msra.mxu3 %v995_v2  ;;  %1102 = vset.pattern.permute.xlu1 %v1331_v5  ;;  %v1505_v10 = vsub.s32 %v483_v9, %v485_v6  ;;  %v992_v12 = vld [vmem:[#allocation8 + $0x20] sm:$0xff]  ;;  %v983_v14 = vld [vmem:[#allocation6 + $0x18] sm:$0xff]  ;;  %v990_v18 = vld [vmem:[#allocation8 + $0x10] sm:$0xff] }
  0x3a   : > { %v991_v15 = vld [vmem:[#allocation8 + $0x18] sm:$0xff]  ;;  %v981_v19 = vld [vmem:[#allocation6 + $0x8] sm:$0xff]  ;;  %v980_v21 = vld [vmem:[#allocation6] sm:$0xff] }
  0x3b   : > { %465 = vmatpush.bf16.msra.mxu0 %v986_v3  ;;  %vm568_vm0 = vcmp.gt.s32.totalorder %v1505_v10, 0  ;;  %vm591_vm1 = vcmp.gt.s32.totalorder %v1505_v10, 1  ;;  %v989_v20 = vld [vmem:[#allocation8 + $0x8] sm:$0xff]  ;;  %v988_v22 = vld [vmem:[#allocation8] sm:$0xff]  ;;  %v1103_v26 = vld [vmem:[%s1553_s4] ss:$0 sm:$0xff] }
  0x3c   : > { %554 = vmatpush.bf16.msra.mxu1 %v994_v4  ;;  %577 = vmatpush.bf16.msra.mxu2 %v994_v4  ;;  %v569_v13 = vsel %vm568_vm0, 1, %v1331_v5  ;;  %v592_v16 = vsel %vm591_vm1, 1, %v1331_v5  ;;  %v503_v23 = vld [vmem:[#allocation2] sm:$0xff]  ;;  %v978_v24 = vld [vmem:[%s324_s30] sm:$0xff]  ;;  %vm614_vm3 = vcmp.gt.s32.totalorder %v1505_v10, 2  ;;  %vm637_vm4 = vcmp.gt.s32.totalorder %v1505_v10, 3 }
  0x3d   : > { %600 = vmatpush.bf16.msra.mxu3 %v994_v4  ;;  %571 = vperm.xlu0 %1101, %v569_v13   ;;  %v504_v25 = vpack.c.bf16 %v503_v23, %v503_v23  ;;  %v979_v36 = vld [vmem:[%s324_s30 + $0x8] sm:$0xff]  ;;  %v615_v37 = vsel %vm614_vm3, 1, %v1331_v5  ;;  %v638_v38 = vsel %vm637_vm4, 1, %v1331_v5 }
  0x3e   : > { %617 = vperm.xlu1 %1102, %v615_v37  }
  0x3f   : > { %466 = vmatpush.bf16.msra.mxu0 %v985_v7 }
  0x40   : > { %555 = vmatpush.bf16.msra.mxu1 %v993_v8  ;;  %578 = vmatpush.bf16.msra.mxu2 %v993_v8 }
  0x41   : > { %601 = vmatpush.bf16.msra.mxu3 %v993_v8 }
  0x43   : > { %467 = vmatpush.bf16.msra.mxu0 %v984_v11 }
  0x44   : > { %556 = vmatpush.bf16.msra.mxu1 %v992_v12  ;;  %579 = vmatpush.bf16.msra.mxu2 %v992_v12 }
  0x45   : > { %602 = vmatpush.bf16.msra.mxu3 %v992_v12  ;;  %594 = vperm.xlu0 %1101, %v592_v16  }
  0x46   : > { %640 = vperm.xlu1 %1102, %v638_v38  }
  0x47   : > { %468 = vmatpush.bf16.msra.mxu0 %v983_v14 }
  0x48   : > { %557 = vmatpush.bf16.msra.mxu1 %v991_v15  ;;  %580 = vmatpush.bf16.msra.mxu2 %v991_v15 }
  0x49   : > { %603 = vmatpush.bf16.msra.mxu3 %v991_v15 }
  0x4b   : > { %469 = vmatpush.bf16.msra.mxu0 %v982_v17 }
  0x4c   : > { %558 = vmatpush.bf16.msra.mxu1 %v990_v18  ;;  %581 = vmatpush.bf16.msra.mxu2 %v990_v18 }
  0x4d   : > { %604 = vmatpush.bf16.msra.mxu3 %v990_v18 }
  0x4f   : > { %470 = vmatpush.bf16.msra.mxu0 %v981_v19 }
  0x50   : > { %559 = vmatpush.bf16.msra.mxu1 %v989_v20  ;;  %582 = vmatpush.bf16.msra.mxu2 %v989_v20 }
  0x51   : > { %605 = vmatpush.bf16.msra.mxu3 %v989_v20 }
  0x53   : > { %471 = vmatpush.bf16.msra.mxu0 %v980_v21 }
  0x54   : > { %560 = vmatpush.bf16.msra.mxu1 %v988_v22  ;;  %583 = vmatpush.bf16.msra.mxu2 %v988_v22 }
  0x55   : > { %606 = vmatpush.bf16.msra.mxu3 %v988_v22 }
  0x56   : > { %472 = vmatmul.bf16.vlgmr.msra.gmra.mxu0 %v978_v24 }
  0x57   : > { %622 = vmatpush.bf16.msrb.mxu0 %v995_v2  ;;  %561 = vmatmul.bf16.vlgmr.msra.gmra.mxu1 %v504_v25 }
  0x5b   : > { %623 = vmatpush.bf16.msrb.mxu0 %v994_v4 }
  0x5f   : > { %624 = vmatpush.bf16.msrb.mxu0 %v993_v8 }
  0x63   : > { %625 = vmatpush.bf16.msrb.mxu0 %v992_v12 }
  0x66   : > { %477 = vmatmul.bf16.gmra.mxu0 %v979_v36 }
  0x67   : > { %626 = vmatpush.bf16.msrb.mxu0 %v991_v15 }
  0x6b   : > { %627 = vmatpush.bf16.msrb.mxu0 %v990_v18 }
  0x6f   : > { %628 = vmatpush.bf16.msrb.mxu0 %v989_v20 }
  0x73   : > { %629 = vmatpush.bf16.msrb.mxu0 %v988_v22 }
  0xaf   : > { %v572_v31 = vpop.permute.xlu0 %571 }
  0xb0   : > { %vm573_vm2 = vcmp.eq.s32.totalorder %v572_v31, 1  ;;  %v618_v52 = vpop.permute.xlu1 %617 }
  0xb1   : > { %vm619_vm6 = vcmp.eq.s32.totalorder %v618_v52, 1 }
  0xb7   : > { %v595_v43 = vpop.permute.xlu0 %594 }
  0xb8   : > { %vm596_vm5 = vcmp.eq.s32.totalorder %v595_v43, 1  ;;  %v641_v61 = vpop.permute.xlu1 %640 }
  0xb9   : > { %vm642_vm7 = vcmp.eq.s32.totalorder %v641_v61, 1 }
  0xd3   : > { %v473_v27 = vpop.f32.mrf.mxu0 }
  0xd4   : > { %v562_v28 = vpop.f32.mrf.mxu1  ;;  %v474_v29 = vadd.f32 %v1103_v26, %v473_v27 }
  0xd6   : > { %v566_v30 = vadd.f32 %v562_v28, %v474_v29 }
  0xd8   : > { %1104 = vtanh.f32 %v566_v30 }
  0xdb   : > { %v475_v39 = vpop.f32.mrf.mxu0 }
  0xdc   : > { %v564_v32 = vpop.f32.mrf.mxu1  ;;  %v476_v40 = vadd.f32 %v1103_v26, %v475_v39 }
  0xde   : > { %v1105_v33 = vpop.eup %1104 }
  0xdf   : > { %v574_v34 = vsel %vm573_vm2, %v1105_v33, %v503_v23 }
  0xe0   : > { %v575_v35 = vpack.c.bf16 %v574_v34, %v574_v34 }
  0xe2   : > { %584 = vmatmul.bf16.vlgmr.msra.gmra.mxu2 %v575_v35 }
  0xe3   : > { %v478_v48 = vpop.f32.mrf.mxu0 }
  0xe4   : > { %v479_v49 = vadd.f32 %v1103_v26, %v478_v48 }
  0xeb   : > { %v480_v57 = vpop.f32.mrf.mxu0 }
  0xec   : > { %v481_v58 = vadd.f32 %v1103_v26, %v480_v57 }
 0x165   : > { %v585_v41 = vpop.f32.mrf.mxu2 }
 0x166   : > { %v589_v42 = vadd.f32 %v585_v41, %v476_v40 }
 0x168   : > { %1106 = vtanh.f32 %v589_v42 }
 0x16d   : > { %v587_v44 = vpop.f32.mrf.mxu2 }
 0x16e   : > { %v1107_v45 = vpop.eup %1106 }
 0x16f   : > { %v597_v46 = vsel %vm596_vm5, %v1107_v45, %v574_v34 }
 0x170   : > { %v598_v47 = vpack.c.bf16 %v597_v46, %v597_v46 }
 0x172   : > { %607 = vmatmul.bf16.vlgmr.msra.gmra.mxu3 %v598_v47 }
 0x1f5   : > { %v608_v50 = vpop.f32.mrf.mxu3 }
 0x1f6   : > { %v612_v51 = vadd.f32 %v608_v50, %v479_v49 }
 0x1f8   : > { %1108 = vtanh.f32 %v612_v51 }
 0x1fd   : > { %v610_v53 = vpop.f32.mrf.mxu3 }
 0x1fe   : > { %v1109_v54 = vpop.eup %1108 }
 0x1ff   : > { %v620_v55 = vsel %vm619_vm6, %v1109_v54, %v597_v46 }
 0x200   : > { %v621_v56 = vpack.c.bf16 %v620_v55, %v620_v55 }
 0x202   : > { %630 = vmatmul.bf16.vlgmr.msrb.gmra.mxu0 %v621_v56 }
 0x27f   : > { %v631_v59 = vpop.f32.mrf.mxu0 }
 0x280   : > { %v635_v60 = vadd.f32 %v631_v59, %v481_v58 }
 0x282   : > { %1110 = vtanh.f32 %v635_v60 }
 0x286   : > { %648 = sbr.rel (%p940_p1) target bundleno = 817 (0x331), region = 72 }
 0x287   : > { %v633_v62 = vpop.f32.mrf.mxu0 }
 0x288   : > { %v1111_v63 = vpop.eup %1110 }
 0x289   : > { %v643_v0 = vsel %vm642_vm7, %v1111_v63, %v620_v55 }
 0x28a   : > { %644 = vst [vmem:[#allocation2] sm:$0xff] %v643_v0 }
 0x28b   : > { %v1003_v1 = vld [vmem:[#allocation9 + $0x38] sm:$0xff]  ;;  %v1002_v2 = vld [vmem:[#allocation9 + $0x30] sm:$0xff]  ;;  %v1001_v3 = vld [vmem:[#allocation9 + $0x28] sm:$0xff] }
 0x28c   : > { %719 = vmatpush.bf16.msra.mxu0 %v1003_v1  ;;  %v1000_v4 = vld [vmem:[#allocation9 + $0x20] sm:$0xff]  ;;  %v999_v5 = vld [vmem:[#allocation9 + $0x18] sm:$0xff]  ;;  %v998_v6 = vld [vmem:[#allocation9 + $0x10] sm:$0xff] }
 0x28d   : > { %v997_v7 = vld [vmem:[#allocation9 + $0x8] sm:$0xff]  ;;  %v996_v8 = vld [vmem:[#allocation9] sm:$0xff]  ;;  %v1112_v11 = vld [vmem:[%s1555_s6] ss:$0 sm:$0xff] }
 0x290   : > { %720 = vmatpush.bf16.msra.mxu0 %v1002_v2 }
 0x291   : > { %v649_v9 = vld [vmem:[#allocation2] sm:$0xff] }
 0x292   : > { %v650_v10 = vpack.c.bf16 %v649_v9, %v649_v9 }
 0x294   : > { %721 = vmatpush.bf16.msra.mxu0 %v1001_v3 }
 0x298   : > { %722 = vmatpush.bf16.msra.mxu0 %v1000_v4 }
 0x29c   : > { %723 = vmatpush.bf16.msra.mxu0 %v999_v5 }
 0x2a0   : > { %724 = vmatpush.bf16.msra.mxu0 %v998_v6 }
 0x2a4   : > { %725 = vmatpush.bf16.msra.mxu0 %v997_v7 }
 0x2a8   : > { %726 = vmatpush.bf16.msra.mxu0 %v996_v8 }
 0x2ab   : > { %727 = vmatmul.bf16.vlgmr.msra.gmra.mxu0 %v650_v10 }
 0x328   : > { %v728_v12 = vpop.f32.mrf.mxu0 }
 0x329   : > { %v729_v13 = vadd.f32 %v1112_v11, %v728_v12 }
 0x32b   : > { %732 = vst [vmem:[#allocation11] sm:$0xff] %v729_v13 }
 0x330   : > { %v730_v14 = vpop.f32.mrf.mxu0 }
 0x331 PF: > { %s1571_s21 = sadd.s32 4294967295, %s1323_s29   ;;  %s743_s23 = sshll.u32 %s1556_s7, 4  ;;  %s744_s23 = int_to_ptr.hbm [resolvable:$true] %s743_s23 }
 0x332   : > { %p1043_p3 = scmp.eq.s32.totalorder %s1571_s21, 1  ;;  %s1332_s10 = smov [#allocation11]  }
 0x333   : > { %s741_s11 = sshll.u32 %s1332_s10, 4  ;;  %s742_s11 = int_to_ptr.vmem [resolvable:$true] %s741_s11 }
 0x334   : > { %1019 = dma.vmem_to_hbm [thread:$0]  (%p1043_p3), %s742_s11, 128, %s744_s23, [#allocation5]  }
 0x335   : > { %1298 = dma.done.wait (%p1043_p3), [#allocation5], 128  }
 0x336   : > { %1300 = vsyncadd (%p1043_p3), [#allocation5], 4294967168 }
 0x337 PF: > { %s23_s29 = sadd.s32 1, %s1323_s29   ;;  %s1572_s14 = smov %s1470_s24 }
 0x338   : > { %p20_p4 = scmp.ge.s32.totalorder %s23_s29, 4   ;;  %s1573_s24 = smov %s1307_s25 }
 0x339   : > { %s1574_s25 = smov %s1311_s26  ;;  %s1575_s26 = smov %s1572_s14 }
 0x33a   : > { %s1576_s27 = smov %s1319_s28  ;;  %s1577_s28 = smov %s1579_s15 }
 0x33b   :  { %22 = sbr.rel (!%p20_p4) target bundleno = 10 (0xa), region = 109 }
 0x340   :  { %757 = vsyncpa [#allocation4], 1 }
 0x341   :  { %759 = vsyncpa [#allocation4 + $0x1], 1 }
 0x342   :  { %760 = vsyncpa [#allocation7], 1 }
 0x343   :  { %761 = vsyncpa [#allocation10], 1 }
 0x344   :  { %762 = vsyncpa [#allocation5], 1 }
 0x345   :  { %764 = vsyncpa [#allocation5 + $0x1], 1 }

</bundles_post_ra>
